<compile_context>
chip_gen: v7x
topology: tpu7x:2x2x1
jax: 0.10.0
libtpu: 0.0.40
codegen_flags: <defaults>
</compile_context>

<pallas_src>
import jax
import jax.numpy as jnp
from jax.experimental import pallas as pl
from jax.experimental.pallas import tpu as pltpu

HIDDEN1 = 128
HIDDEN2 = 64
HIDDEN2_PAD = 128  # lane-dense padded hidden-2 width (exact; padded cols contribute 0)


def _round_up(x, m):
    return ((x + m - 1) // m) * m


def mlp_kernel(x_ref, w1_ref, b1_ref, w2_ref, b2_ref, w3_ref, b3_ref, o_ref):
    # Three fused MXU matmuls in VMEM; ReLU on VPU, exact sigmoid (exp on EUP);
    # all elementwise work hides under the HBM pipeline.
    x = x_ref[...]
    h1 = jnp.dot(x.astype(w1_ref.dtype), w1_ref[...],
                 preferred_element_type=jnp.float32) + b1_ref[...]
    h1 = jnp.maximum(h1, 0.0)                                    # ReLU
    h2 = jnp.dot(h1.astype(w2_ref.dtype), w2_ref[...],
                 preferred_element_type=jnp.float32) + b2_ref[...]
    h2 = 1.0 / (1.0 + jnp.exp(-h2))                              # exact sigmoid
    y = jnp.dot(h2.astype(w3_ref.dtype), w3_ref[...],
                preferred_element_type=jnp.float32) + b3_ref[...]
    o_ref[...] = y.astype(o_ref.dtype)


def prepare_params(params, dtype=jnp.float32):
    """One-time layout prep (hoisted out of the forward hot path).

    Transposes PyTorch-style (out, in) weights to (in, out), reshapes biases to
    (1, out) (kept f32 for accuracy), and zero-pads HIDDEN2 64 -> 128:
      * w2 gains 64 zero output columns, b2 gains 64 zeros,
      * w3 gains 64 zero input rows (so sigmoid(0)=0.5 x 0 contributes nothing).
    Pass dtype=jnp.bfloat16 (and feed bf16 x) for the bf16 I/O fast path.
    """
    w1, b1 = params["fc1"]
    w2, b2 = params["fc2"]
    w3, b3 = params["out"]
    out_size = w3.shape[0]

    w2t = jnp.zeros((HIDDEN1, HIDDEN2_PAD), dtype).at[:, :HIDDEN2].set(
        w2.T.astype(dtype))
    b2r = jnp.zeros((1, HIDDEN2_PAD), jnp.float32).at[:, :HIDDEN2].set(
        b2[None, :].astype(jnp.float32))
    w3t = jnp.zeros((HIDDEN2_PAD, out_size), dtype).at[:HIDDEN2, :].set(
        w3.T.astype(dtype))

    prepared = {
        "w1": w1.T.astype(dtype), "b1": b1[None, :].astype(jnp.float32),
        "w2": w2t,                "b2": b2r,
        "w3": w3t,                "b3": b3[None, :].astype(jnp.float32),
    }
    return prepared, out_size


def mlp_forward(x, prepared, out_size, *, block_m=1024, out_dtype=None):
    """x: [B, input_size] (f32 or bf16 from the producer). prepared: prepare_params output."""
    w1, b1 = prepared["w1"], prepared["b1"]
    w2, b2 = prepared["w2"], prepared["b2"]
    w3, b3 = prepared["w3"], prepared["b3"]

    B, in_size = x.shape
    out_dtype = out_dtype or x.dtype
    xbytes = jnp.dtype(x.dtype).itemsize
    obytes = jnp.dtype(out_dtype).itemsize

    # Batch tile: multiple of 8 sublanes, capped by block_m and by a conservative
    # VMEM budget (~8 MiB) for the double-buffered x/out tiles.
    per_row_io = in_size * xbytes + out_size * obytes
    io_budget = 8 * 2**20
    tm_vmem = max(8, (io_budget // (2 * max(per_row_io, 1))) // 8 * 8)
    tm = min(block_m, _round_up(B, 8), tm_vmem)

    # v7x megacore: guarantee >= 2 grid blocks for moderately large batches so
    # dimension_semantics=("parallel",) actually shards over both TensorCores.
    if pl.cdiv(B, tm) == 1 and B > 256:
        tm = _round_up(pl.cdiv(B, 2), 8)

    grid = (pl.cdiv(B, tm),)  # ragged last block; no batch pad, no extra HBM pass

    # VMEM estimate: resident weights (x2 buffers) + double-buffered I/O tiles
    # + f32 intermediates; clamp to a range safe on all gens (v7x: 64 MiB phys).
    w_bytes = sum(int(a.size) * a.dtype.itemsize for a in (w1, b1, w2, b2, w3, b3))
    est = (2 * w_bytes + 2 * tm * per_row_io
           + 4 * tm * (HIDDEN1 + HIDDEN2_PAD) * 4)
    vmem_limit = int(min(max(2 * est, 32 * 2**20), 48 * 2**20))

    def resident(shape):
        # Weights / biases: one full-array block, same block every grid step
        # (stays VMEM-resident, no per-step DMA).
        return pl.BlockSpec(shape, lambda i: (0, 0))

    return pl.pallas_call(
        mlp_kernel,
        out_shape=jax.ShapeDtypeStruct((B, out_size), out_dtype),
        grid=grid,
        in_specs=[
            pl.BlockSpec((tm, in_size), lambda i: (i, 0)),  # x: tiled over batch
            resident(w1.shape), resident(b1.shape),
            resident(w2.shape), resident(b2.shape),
            resident(w3.shape), resident(b3.shape),
        ],
        out_specs=pl.BlockSpec((tm, out_size), lambda i: (i, 0)),  # narrow store
        compiler_params=pltpu.CompilerParams(
            dimension_semantics=("parallel",),   # megacore sharding on v7x
            vmem_limit_bytes=vmem_limit,
        ),
    )(x, w1, b1, w2, b2, w3, b3)


def init_params(key, input_size, output_size):
    """Deterministic synthetic init mimicking nn.Linear (out, in) shapes."""
    def linear(key, fan_in, fan_out):
        kw, kb = jax.random.split(key)
        bound = 1.0 / jnp.sqrt(fan_in)
        w = jax.random.uniform(kw, (fan_out, fan_in), jnp.float32, -bound, bound)
        b = jax.random.uniform(kb, (fan_out,), jnp.float32, -bound, bound)
        return w, b

    k1, k2, k3 = jax.random.split(key, 3)
    return {
        "fc1": linear(k1, input_size, HIDDEN1),
        "fc2": linear(k2, HIDDEN1, HIDDEN2),
        "out": linear(k3, HIDDEN2, output_size),
    }


def reference_forward(x, params):
    w1, b1 = params["fc1"]
    w2, b2 = params["fc2"]
    w3, b3 = params["out"]
    h1 = jnp.maximum(x @ w1.T + b1, 0.0)
    h2 = jax.nn.sigmoid(h1 @ w2.T + b2)
    return h2 @ w3.T + b3


if __name__ == "__main__":
    key = jax.random.PRNGKey(0)
    kx, kp = jax.random.split(key)

    batch, input_size, output_size = 8, 32, 10
    x = jax.random.normal(kx, (batch, input_size), jnp.float32)
    params = init_params(kp, input_size, output_size)

    prepared, out_size = prepare_params(params)   # one-time layout prep
    out = mlp_forward(x, prepared, out_size)
    out = jax.block_until_ready(out)

    ref = reference_forward(x, params)
    assert out.shape == (batch, output_size)
    max_err = float(jnp.max(jnp.abs(out - ref)))
    assert max_err < 2e-3, f"max abs error {max_err}"

    print("KERNEL_OK")
</pallas_src>

<mosaic_0001>
module attributes {stable_mosaic.version = 11 : i64} {
  func.func @mlp_kernel(%arg0: i32, %arg1: memref<8x32xf32, #tpu.memory_space<vmem>>, %arg2: memref<32x128xf32, #tpu.memory_space<vmem>>, %arg3: memref<1x128xf32, #tpu.memory_space<vmem>>, %arg4: memref<128x128xf32, #tpu.memory_space<vmem>>, %arg5: memref<1x128xf32, #tpu.memory_space<vmem>>, %arg6: memref<128x10xf32, #tpu.memory_space<vmem>>, %arg7: memref<1x10xf32, #tpu.memory_space<vmem>>, %arg8: memref<8x10xf32, #tpu.memory_space<vmem>>) attributes {dimension_semantics = [#tpu.dimension_semantics<parallel>], iteration_bounds = array<i64: 1>, scalar_prefetch = 0 : i64, scratch_operands = 0 : i64, tpu.core_type = #tpu.core_type<tc>, window_params = [{transform_indices = @transform_0, window_bounds = array<i64: 8, 32>}, {pipeline_mode = #tpu.pipeline_mode<synchronous>, transform_indices = @transform_1, window_bounds = array<i64: 32, 128>}, {pipeline_mode = #tpu.pipeline_mode<synchronous>, transform_indices = @transform_2, window_bounds = array<i64: 1, 128>}, {pipeline_mode = #tpu.pipeline_mode<synchronous>, transform_indices = @transform_3, window_bounds = array<i64: 128, 128>}, {pipeline_mode = #tpu.pipeline_mode<synchronous>, transform_indices = @transform_4, window_bounds = array<i64: 1, 128>}, {pipeline_mode = #tpu.pipeline_mode<synchronous>, transform_indices = @transform_5, window_bounds = array<i64: 128, 10>}, {pipeline_mode = #tpu.pipeline_mode<synchronous>, transform_indices = @transform_6, window_bounds = array<i64: 1, 10>}, {transform_indices = @transform_7, window_bounds = array<i64: 8, 10>}]} {
    %c0 = arith.constant 0 : index
    %c0_0 = arith.constant 0 : index
    %0 = vector.load %arg1[%c0, %c0_0] : memref<8x32xf32, #tpu.memory_space<vmem>>, vector<8x32xf32>
    %c0_1 = arith.constant 0 : index
    %c0_2 = arith.constant 0 : index
    %1 = vector.load %arg2[%c0_1, %c0_2] : memref<32x128xf32, #tpu.memory_space<vmem>>, vector<32x128xf32>
    %cst = arith.constant dense<0.000000e+00> : vector<8x128xf32>
    %2 = tpu.matmul %0, %1, %cst {dimension_numbers = #tpu.dot_dimension_numbers<[1], [0], [0], [1], [0, 0, 1, 1], [], []>} : vector<8x32xf32>, vector<32x128xf32>, vector<8x128xf32> -> vector<8x128xf32>
    %c0_3 = arith.constant 0 : index
    %c0_4 = arith.constant 0 : index
    %3 = vector.load %arg3[%c0_3, %c0_4] : memref<1x128xf32, #tpu.memory_space<vmem>>, vector<1x128xf32>
    %4 = vector.broadcast %3 : vector<1x128xf32> to vector<8x128xf32>
    %5 = arith.addf %2, %4 : vector<8x128xf32>
    %cst_5 = arith.constant 0.000000e+00 : f32
    %6 = vector.broadcast %cst_5 : f32 to vector<8x128xf32>
    %7 = arith.maximumf %5, %6 : vector<8x128xf32>
    %c0_6 = arith.constant 0 : index
    %c0_7 = arith.constant 0 : index
    %8 = vector.load %arg4[%c0_6, %c0_7] : memref<128x128xf32, #tpu.memory_space<vmem>>, vector<128x128xf32>
    %cst_8 = arith.constant dense<0.000000e+00> : vector<8x128xf32>
    %9 = tpu.matmul %7, %8, %cst_8 {dimension_numbers = #tpu.dot_dimension_numbers<[1], [0], [0], [1], [0, 0, 1, 1], [], []>} : vector<8x128xf32>, vector<128x128xf32>, vector<8x128xf32> -> vector<8x128xf32>
    %c0_9 = arith.constant 0 : index
    %c0_10 = arith.constant 0 : index
    %10 = vector.load %arg5[%c0_9, %c0_10] : memref<1x128xf32, #tpu.memory_space<vmem>>, vector<1x128xf32>
    %11 = vector.broadcast %10 : vector<1x128xf32> to vector<8x128xf32>
    %12 = arith.addf %9, %11 : vector<8x128xf32>
    %cst_11 = arith.constant 0.000000e+00 : f32
    %13 = vector.broadcast %cst_11 : f32 to vector<8x128xf32>
    %14 = arith.subf %13, %12 : vector<8x128xf32>
    %15 = math.exp %14 : vector<8x128xf32>
    %cst_12 = arith.constant 1.000000e+00 : f32
    %16 = vector.broadcast %cst_12 : f32 to vector<8x128xf32>
    %17 = arith.addf %16, %15 : vector<8x128xf32>
    %cst_13 = arith.constant 1.000000e+00 : f32
    %18 = vector.broadcast %cst_13 : f32 to vector<8x128xf32>
    %19 = arith.divf %18, %17 : vector<8x128xf32>
    %c0_14 = arith.constant 0 : index
    %c0_15 = arith.constant 0 : index
    %20 = vector.load %arg6[%c0_14, %c0_15] : memref<128x10xf32, #tpu.memory_space<vmem>>, vector<128x10xf32>
    %cst_16 = arith.constant dense<0.000000e+00> : vector<8x10xf32>
    %21 = tpu.matmul %19, %20, %cst_16 {dimension_numbers = #tpu.dot_dimension_numbers<[1], [0], [0], [1], [0, 0, 1, 1], [], []>} : vector<8x128xf32>, vector<128x10xf32>, vector<8x10xf32> -> vector<8x10xf32>
    %c0_17 = arith.constant 0 : index
    %c0_18 = arith.constant 0 : index
    %22 = vector.load %arg7[%c0_17, %c0_18] : memref<1x10xf32, #tpu.memory_space<vmem>>, vector<1x10xf32>
    %23 = vector.broadcast %22 : vector<1x10xf32> to vector<8x10xf32>
    %24 = arith.addf %21, %23 : vector<8x10xf32>
    %c0_19 = arith.constant 0 : index
    %c0_20 = arith.constant 0 : index
    %25 = vector.load %arg8[%c0_19, %c0_20] : memref<8x10xf32, #tpu.memory_space<vmem>>, vector<8x10xf32>
    tpu.vector_store %arg8[%c0_19, %c0_20], %24 {strides = array<i32>} : memref<8x10xf32, #tpu.memory_space<vmem>>, vector<8x10xf32>,
    return
  }
  func.func @transform_0(%arg0: i32) -> (i32, i32) {
    %c0_i32 = arith.constant 0 : i32
    %c0_i32_0 = arith.constant 0 : i32
    return %arg0, %c0_i32 : i32, i32
  }
  func.func @transform_1(%arg0: i32) -> (i32, i32) {
    %c0_i32 = arith.constant 0 : i32
    %c0_i32_0 = arith.constant 0 : i32
    %c0_i32_1 = arith.constant 0 : i32
    return %c0_i32, %c0_i32_0 : i32, i32
  }
  func.func @transform_2(%arg0: i32) -> (i32, i32) {
    %c0_i32 = arith.constant 0 : i32
    %c0_i32_0 = arith.constant 0 : i32
    %c0_i32_1 = arith.constant 0 : i32
    return %c0_i32, %c0_i32_0 : i32, i32
  }
  func.func @transform_3(%arg0: i32) -> (i32, i32) {
    %c0_i32 = arith.constant 0 : i32
    %c0_i32_0 = arith.constant 0 : i32
    %c0_i32_1 = arith.constant 0 : i32
    return %c0_i32, %c0_i32_0 : i32, i32
  }
  func.func @transform_4(%arg0: i32) -> (i32, i32) {
    %c0_i32 = arith.constant 0 : i32
    %c0_i32_0 = arith.constant 0 : i32
    %c0_i32_1 = arith.constant 0 : i32
    return %c0_i32, %c0_i32_0 : i32, i32
  }
  func.func @transform_5(%arg0: i32) -> (i32, i32) {
    %c0_i32 = arith.constant 0 : i32
    %c0_i32_0 = arith.constant 0 : i32
    %c0_i32_1 = arith.constant 0 : i32
    return %c0_i32, %c0_i32_0 : i32, i32
  }
  func.func @transform_6(%arg0: i32) -> (i32, i32) {
    %c0_i32 = arith.constant 0 : i32
    %c0_i32_0 = arith.constant 0 : i32
    %c0_i32_1 = arith.constant 0 : i32
    return %c0_i32, %c0_i32_0 : i32, i32
  }
  func.func @transform_7(%arg0: i32) -> (i32, i32) {
    %c0_i32 = arith.constant 0 : i32
    %c0_i32_0 = arith.constant 0 : i32
    return %arg0, %c0_i32 : i32, i32
  }
}

</mosaic_0001>

<bundles_post_ra>
// kernel: tpu_custom_call.1
= control target key start
LH: loop header
LB: loop body
LE: loop exit
PB: predicated region body
PF: predicated region fallthrough
CT: control target
= control target key end

     0   :  { %12 = vsyncpa [#allocation3], 0  ;;  %s774_s0 = inlined_call_operand.vmem [shape: f32[8,32], index: 0, kind: input, shape index: {}]   ;;  %s775_s1 = inlined_call_operand.hbm [shape: f32[32,128], index: 1, kind: input, shape index: {}]   ;;  %s776_s2 = inlined_call_operand.vmem [shape: f32[1,128], index: 2, kind: input, shape index: {}]   ;;  %s777_s3 = inlined_call_operand.vmem [shape: f32[128,128], index: 3, kind: input, shape index: {}]   ;;  %s778_s4 = inlined_call_operand.vmem [shape: f32[1,128], index: 4, kind: input, shape index: {}]   ;;  %s779_s5 = inlined_call_operand.vmem [shape: f32[128,10], index: 5, kind: input, shape index: {}]   ;;  %s780_s6 = inlined_call_operand.vmem [shape: f32[1,10], index: 6, kind: input, shape index: {}]   ;;  %s781_s7 = inlined_call_operand.hbm [shape: f32[8,10], index: 7, kind: output, shape index: {}]  }
   0x1   :  { %13 = vsyncpa [#allocation4], 0  ;;  %s574_s24 = smov [#allocation2]   ;;  %s526_s28 = scalar_lea.hbm %s775_s1, 512 }
   0x2   :  { %s21_s25 = sshll.u32 %s574_s24, 4  ;;  %p527_p0 = scmp.ne.s32.totalorder %s775_s1, %s526_s28  ;;  %s22_s25 = int_to_ptr.vmem [resolvable:$true] %s21_s25 }
   0x3   :  { %p530_p1 = scmp.lt.u32.totalorder %s526_s28, %s775_s1 }
   0x5   :  { %p532_p2 = pnand %p530_p1, %p527_p0 }
   0x7   :  { %535 = shalt.err (!%p532_p2)
}
   0x8   :  { %s536_s10 = scalar_lea.vmem %s22_s25, 512  ;;  %p541_p4 = scmp.lt.s32.totalorder %s22_s25, %s22_s25 }
   0x9   :  { %p537_p3 = scmp.ne.s32.totalorder %s22_s25, %s536_s10  ;;  %p542_p5 = scmp.lt.s32.totalorder %s536_s10, %s536_s10 }
   0xb   :  { %p543_p6 = por %p542_p5, %p541_p4 }
   0xd   :  { %p544_p7 = pnand %p543_p6, %p537_p3 }
   0xf   :  { %547 = shalt.err (!%p544_p7)
}
  0x10   :  { %s575_s11 = smov 128   ;;  %s576_s12 = smov 8  }
  0x11   :  { %27 = dma.hbm_to_vmem [thread:$0]  %s775_s1, 512, %s22_s25, [#allocation3], %s575_s11, %s575_s11, %s576_s12  }
  0x12   :  { %570 = dma.done.wait [#allocation3], 512  }
  0x13   :  { %571 = vsyncadd [#allocation3], 4294966784  ;;  %v577_v0 = vmov 0.0|0.0   ;;  %vm578_vm0 = vmmov 0   ;;  %v579_v1 = vmov 0.0   ;;  %v42_v2 = vld [vmem:[#allocation2] sm:$0xff] }
  0x14   :  { %461 = vmatprep.subr.bf16.mxu0 %v577_v0  ;;  %388 = vmatprep.mubr.msk.f32.mxu0 %vm578_vm0, %v579_v1  ;;  %v43_v3 = vld [vmem:[#allocation2 + $0x8] sm:$0xff]  ;;  %v44_v4 = vld [vmem:[#allocation2 + $0x10] sm:$0xff]  ;;  %v45_v6 = vld [vmem:[#allocation2 + $0x18] sm:$0xff]  ;;  %vm53_vm1 = vcmask 261120   ;;  %s580_s8 = smov [#allocation5]   ;;  %vm320_vm2 = vcmask 80896  }
  0x15   :  { %467 = vmatprep.subr.bf16.mxu1 %v577_v0  ;;  %423 = vmatprep.mubr.msk.f32.mxu1 %vm578_vm0, %v579_v1  ;;  %v462_v5 = vpack.c.bf16 %v43_v3, %v42_v2  ;;  %v128_v7 = vld [vmem:[%s777_s3] sm:$0xff]  ;;  %v129_v8 = vld [vmem:[%s777_s3 + $0x8] sm:$0xff]  ;;  %v130_v9 = vld [vmem:[%s777_s3 + $0x10] sm:$0xff]  ;;  %v465_v11 = vpack.c.bf16 %v45_v6, %v44_v4 }
  0x16   :  { %v131_v10 = vld [vmem:[%s777_s3 + $0x18] sm:$0xff]  ;;  %v468_v12 = vpack.c.bf16 %v129_v8, %v128_v7  ;;  %v132_v14 = vld [vmem:[%s777_s3 + $0x20] sm:$0xff]  ;;  %v133_v15 = vld [vmem:[%s777_s3 + $0x28] sm:$0xff] }
  0x17   :  { %463 = vmatpush3.bf16.msra.mxu0 %v462_v5  ;;  %v471_v13 = vpack.c.bf16 %v131_v10, %v130_v9  ;;  %v41_v16 = vld [vmem:[%s774_s0] sm:$0xff]  ;;  %v474_v17 = vpack.c.bf16 %v133_v15, %v132_v14  ;;  %v134_v18 = vld [vmem:[%s777_s3 + $0x30] sm:$0xff]  ;;  %v135_v19 = vld [vmem:[%s777_s3 + $0x38] sm:$0xff]  ;;  %s328_s0 = sshll.u32 %s580_s8, 4  ;;  %s329_s0 = int_to_ptr.vmem [resolvable:$true] %s328_s0 }
  0x18   :  { %464 = vmatprep.subr.bf16.mxu0 %v577_v0  ;;  %469 = vmatpush3.bf16.msra.mxu1 %v468_v12  ;;  %v477_v20 = vpack.c.bf16 %v135_v19, %v134_v18  ;;  %v136_v21 = vld [vmem:[%s777_s3 + $0x40] sm:$0xff]  ;;  %v137_v22 = vld [vmem:[%s777_s3 + $0x48] sm:$0xff]  ;;  %v138_v24 = vld [vmem:[%s777_s3 + $0x50] sm:$0xff]  ;;  %p553_p9 = scmp.lt.s32.totalorder %s329_s0, %s329_s0 }
  0x19   :  { %470 = vmatprep.subr.bf16.mxu1 %v577_v0  ;;  %v480_v23 = vpack.c.bf16 %v137_v22, %v136_v21  ;;  %v139_v25 = vld [vmem:[%s777_s3 + $0x58] sm:$0xff]  ;;  %v140_v27 = vld [vmem:[%s777_s3 + $0x60] sm:$0xff]  ;;  %v141_v28 = vld [vmem:[%s777_s3 + $0x68] sm:$0xff] }
  0x1a   :  { %v483_v26 = vpack.c.bf16 %v139_v25, %v138_v24  ;;  %v486_v29 = vpack.c.bf16 %v141_v28, %v140_v27  ;;  %v142_v30 = vld [vmem:[%s777_s3 + $0x70] sm:$0xff]  ;;  %v143_v31 = vld [vmem:[%s777_s3 + $0x78] sm:$0xff]  ;;  %v337_v33 = vld [vmem:[%s776_s2] ss:$0 sm:$0xff] }
  0x1b   :  { %466 = vmatpush3.bf16.msra.mxu0 %v465_v11  ;;  %v489_v32 = vpack.c.bf16 %v143_v31, %v142_v30  ;;  %v227_v38 = vld [vmem:[%s779_s5] sm:$0xff]  ;;  %v228_v39 = vld [vmem:[%s779_s5 + $0x8] sm:$0xff]  ;;  %v229_v41 = vld [vmem:[%s779_s5 + $0x10] sm:$0xff] }
  0x1c   :  { %491 = vmatprep.subr.bf16.mxu0 %v577_v0  ;;  %472 = vmatpush3.bf16.msra.mxu1 %v471_v13  ;;  %v492_v40 = vpack.c.bf16 %v228_v39, %v227_v38  ;;  %v230_v42 = vld [vmem:[%s779_s5 + $0x18] sm:$0xff]  ;;  %v231_v44 = vld [vmem:[%s779_s5 + $0x20] sm:$0xff]  ;;  %v232_v45 = vld [vmem:[%s779_s5 + $0x28] sm:$0xff] }
  0x1d   :  { %473 = vmatprep.subr.bf16.mxu1 %v577_v0  ;;  %v495_v43 = vpack.c.bf16 %v230_v42, %v229_v41  ;;  %v498_v46 = vpack.c.bf16 %v232_v45, %v231_v44  ;;  %v233_v47 = vld [vmem:[%s779_s5 + $0x30] sm:$0xff]  ;;  %v234_v48 = vld [vmem:[%s779_s5 + $0x38] sm:$0xff]  ;;  %v235_v50 = vld [vmem:[%s779_s5 + $0x40] sm:$0xff] }
  0x1e   :  { %389 = vmatmul.mubr.msk.f32.vlgmr.msra.gmra.mrb[0].mxu0 %vm53_vm1, %v41_v16  ;;  %v501_v49 = vpack.c.bf16 %v234_v48, %v233_v47  ;;  %v236_v51 = vld [vmem:[%s779_s5 + $0x48] sm:$0xff]  ;;  %v237_v53 = vld [vmem:[%s779_s5 + $0x50] sm:$0xff]  ;;  %v238_v54 = vld [vmem:[%s779_s5 + $0x58] sm:$0xff] }
  0x1f   :  { %458 = vmatprep.mubr.msk.f32.mxu0 %vm578_vm0, %v579_v1  ;;  %493 = vmatpush3.bf16.msra.mxu0 %v492_v40  ;;  %v504_v52 = vpack.c.bf16 %v236_v51, %v235_v50  ;;  %v507_v55 = vpack.c.bf16 %v238_v54, %v237_v53  ;;  %v239_v56 = vld [vmem:[%s779_s5 + $0x60] sm:$0xff]  ;;  %v240_v57 = vld [vmem:[%s779_s5 + $0x68] sm:$0xff]  ;;  %v241_v59 = vld [vmem:[%s779_s5 + $0x70] sm:$0xff] }
  0x20   :  { %475 = vmatpush3.bf16.msra.mxu1 %v474_v17  ;;  %494 = vmatprep.subr.bf16.mxu0 %v577_v0  ;;  %v510_v58 = vpack.c.bf16 %v240_v57, %v239_v56  ;;  %v242_v60 = vld [vmem:[%s779_s5 + $0x78] sm:$0xff]  ;;  %v339_v62 = vld [vmem:[%s778_s4] ss:$0 sm:$0xff]  ;;  %s548_s4 = scalar_lea.vmem %s329_s0, 128 }
  0x21   :  { %476 = vmatprep.subr.bf16.mxu1 %v577_v0  ;;  %v513_v61 = vpack.c.bf16 %v242_v60, %v241_v59  ;;  %p549_p8 = scmp.ne.s32.totalorder %s329_s0, %s548_s4  ;;  %p554_p10 = scmp.lt.s32.totalorder %s548_s4, %s548_s4 }
  0x23   :  { %496 = vmatpush3.bf16.msra.mxu0 %v495_v43  ;;  %p555_p11 = por %p554_p10, %p553_p9 }
  0x24   :  { %478 = vmatpush3.bf16.msra.mxu1 %v477_v20  ;;  %497 = vmatprep.subr.bf16.mxu0 %v577_v0 }
  0x25   :  { %479 = vmatprep.subr.bf16.mxu1 %v577_v0  ;;  %p556_p12 = pnand %p555_p11, %p549_p8 }
  0x27   :  { %499 = vmatpush3.bf16.msra.mxu0 %v498_v46 }
  0x28   :  { %481 = vmatpush3.bf16.msra.mxu1 %v480_v23  ;;  %500 = vmatprep.subr.bf16.mxu0 %v577_v0 }
  0x29   :  { %482 = vmatprep.subr.bf16.mxu1 %v577_v0 }
  0x2b   :  { %502 = vmatpush3.bf16.msra.mxu0 %v501_v49 }
  0x2c   :  { %484 = vmatpush3.bf16.msra.mxu1 %v483_v26  ;;  %503 = vmatprep.subr.bf16.mxu0 %v577_v0 }
  0x2d   :  { %485 = vmatprep.subr.bf16.mxu1 %v577_v0 }
  0x2f   :  { %505 = vmatpush3.bf16.msra.mxu0 %v504_v52 }
  0x30   :  { %487 = vmatpush3.bf16.msra.mxu1 %v486_v29  ;;  %506 = vmatprep.subr.bf16.mxu0 %v577_v0 }
  0x31   :  { %488 = vmatprep.subr.bf16.mxu1 %v577_v0 }
  0x33   :  { %508 = vmatpush3.bf16.msra.mxu0 %v507_v55 }
  0x34   :  { %490 = vmatpush3.bf16.msra.mxu1 %v489_v32  ;;  %509 = vmatprep.subr.bf16.mxu0 %v577_v0 }
  0x37   :  { %511 = vmatpush3.bf16.msra.mxu0 %v510_v58 }
  0x38   :  { %512 = vmatprep.subr.bf16.mxu0 %v577_v0  ;;  %v340_v0 = vld [vmem:[%s780_s6] ss:$0 sm:$0xff] }
  0x3b   :  { %514 = vmatpush3.bf16.msra.mxu0 %v513_v61 }
  0xf1   :  { %v123_v34 = vpop.f32.mrb[0].mxu0 }
  0xf2   :  { %v124_v35 = vadd.f32 %v337_v33, %v123_v34  ;;  %v390_v36 = vpop.f32.mrb[1].mxu0 }
  0xf4   :  { %v127_v37 = vmax.f32 %v124_v35, 0.0 }
  0xf6   :  { %424 = vmatmul.mubr.f32.vlgmr.msra.gmra.mrb[0].mxu1 %v127_v37 }
 0x1c9   :  { %v217_v63 = vpop.f32.mrb[0].mxu1 }
 0x1ca   :  { %v218_v1 = vadd.f32 %v339_v62, %v217_v63  ;;  %v425_v2 = vpop.f32.mrb[1].mxu1 }
 0x1cc   :  { %v221_v3 = vsub.f32 0.0, %v218_v1 }
 0x1ce   :  { %v222_v4 = vmul.f32 1.442695, %v221_v3 }
 0x1d0   :  { %522 = vpow2.f32 %v222_v4 }
 0x1da   :  { %v523_v5 = vpop.eup %522 }
 0x1db   :  { %v224_v6 = vadd.f32 1.0, %v523_v5 }
 0x1dd   :  { %524 = vrcp.f32 %v224_v6 }
 0x1e7   :  { %v525_v7 = vpop.eup %524 }
 0x1e8   :  { %459 = vmatmul.mubr.f32.vlgmr.msra.gmra.mrb[2].mxu0 %v525_v7 }
 0x2bb   :  { %v316_v8 = vpop.f32.mrb[2].mxu0 }
 0x2bc   :  { %v317_v9 = vadd.f32 %v340_v0, %v316_v8  ;;  %v460_v10 = vpop.f32.mrb[3].mxu0 }
 0x2be   :  { %321 = vst.msk [vmem:[#allocation5] sm:$0xff] %vm320_vm2, %v317_v9 }
 0x2bf   :  { %559 = shalt.err (!%p556_p12)
}
 0x2c0   :  { %s560_s11 = scalar_lea.hbm %s781_s7, 128 }
 0x2c1   :  { %p561_p13 = scmp.ne.s32.totalorder %s781_s7, %s560_s11  ;;  %p564_p0 = scmp.lt.u32.totalorder %s560_s11, %s781_s7 }
 0x2c3   :  { %p566_p1 = pnand %p564_p0, %p561_p13 }
 0x2c5   :  { %569 = shalt.err (!%p566_p1)
}
 0x2c6   :  { %331 = dma.vmem_to_hbm [thread:$0]  %s329_s0, 128, %s781_s7, [#allocation4]  }
 0x2c7   :  { %572 = dma.done.wait [#allocation4], 128  }
 0x2c8   :  { %573 = vsyncadd [#allocation4], 4294967168 }
 0x2c9   :  { %335 = vsyncpa [#allocation3], 1 }
 0x2ca   :  { %336 = vsyncpa [#allocation4], 1 }

</bundles_post_ra>
